<compile_context>
chip_gen: v5e
topology: v5e:2x2
jax: 0.10.0
libtpu: 0.0.40
codegen_flags: <defaults>
</compile_context>

<pallas_src>
import jax
import jax.numpy as jnp
from jax.experimental import pallas as pl
from jax.experimental.pallas import tpu as pltpu


def _decoder_seq_kernel(tok_ref,                        # [U, B, 1] int32 (VMEM)
                        emb_ref, h0_ref, c0_ref,        # VMEM resident inputs
                        wih_ref, whh_ref, b_ref, wfc_ref, bfc_ref,
                        pred_ref, h_out_ref, c_out_ref,  # outputs
                        h_s, c_s):                       # VMEM scratch (state carry)
    blk = pl.program_id(0)
    U = tok_ref.shape[0]
    B, H = h_s.shape
    O, _E = emb_ref.shape
    O_pad = bfc_ref.shape[-1]

    # Load the initial LSTM state into the VMEM carry on the first grid step.
    @pl.when(blk == 0)
    def _init():
        h_s[...] = h0_ref[...]
        c_s[...] = c0_ref[...]

    # ---- vectorized in-kernel embedding lookup (one compare for all U steps) ----
    # Clamp ids so an out-of-range token cannot silently read a padded lane.
    toks = jnp.clip(tok_ref[...], 0, O - 1)                          # [U, B, 1]
    col = jax.lax.broadcasted_iota(jnp.int32, (U, B, O), 2)
    onehot_all = (col == toks).astype(jnp.float32)                   # [U, B, O]

    # Hoisted resident weights and bias broadcasts (broadcast_in_dim is not CSE'd).
    emb = emb_ref[...]
    w_ih = wih_ref[...]
    w_hh = whh_ref[...]
    w_fc = wfc_ref[...]
    bias = jnp.broadcast_to(b_ref[...], (B, 4 * H))
    bias_fc = jnp.broadcast_to(bfc_ref[...], (B, O_pad))

    h = h_s[...]
    c = c_s[...]
    for u in range(U):  # static unroll; U <= 8
        # Embedding row via one-hot matmul on the MXU (independent of h/c,
        # so the scheduler can overlap it with the previous step's update).
        x = jnp.dot(onehot_all[u], emb, preferred_element_type=jnp.float32)   # [B, E]

        # Two accumulating dots instead of a lane-axis concat.
        gates = (jnp.dot(x, w_ih, preferred_element_type=jnp.float32)
                 + jnp.dot(h, w_hh, preferred_element_type=jnp.float32)
                 + bias)                                              # [B, 4H]

        # One full-width sigmoid + one full-width tanh (2 EUP pushes, not 4).
        sg = jax.nn.sigmoid(gates)
        tg = jnp.tanh(gates)
        i_g = sg[:, 0 * H:1 * H]
        f_g = sg[:, 1 * H:2 * H]
        g_g = tg[:, 2 * H:3 * H]
        o_g = sg[:, 3 * H:4 * H]

        c = f_g * c + i_g * g_g
        h = o_g * jnp.tanh(c)

        # fc head: lane-dense (O padded to 128) -> dense vst into the output block.
        pred_ref[u] = jnp.dot(h, w_fc, preferred_element_type=jnp.float32) + bias_fc

    h_s[...] = h
    c_s[...] = c

    # Write the final state exactly once.
    @pl.when(blk == pl.num_programs(0) - 1)
    def _final():
        h_out_ref[...] = h_s[...]
        c_out_ref[...] = c_s[...]


def _pick_unroll(T, max_u=8):
    """Largest U <= max_u that divides T (steps per grid iteration)."""
    for u in range(min(T, max_u), 0, -1):
        if T % u == 0:
            return u
    return 1


def decoder_decode(params, tokens_tb, hidden, cell):
    """Fused multi-step decode. tokens_tb: [T, B] int32; hidden/cell: [1, B, H]."""
    tokens_tb = tokens_tb.astype(jnp.int32)
    T, B = tokens_tb.shape
    H = hidden.shape[-1]
    O, E = params.embedding.shape
    O_pad = params.b_fc_pad.shape[-1]

    U = _pick_unroll(T)
    n_blk = T // U
    tokens_3d = tokens_tb.reshape(T, B, 1)

    grid_spec = pltpu.PrefetchScalarGridSpec(
        num_scalar_prefetch=0,
        grid=(n_blk,),
        in_specs=[
            pl.BlockSpec((U, B, 1), lambda t: (t, 0, 0)),           # tokens (VMEM)
            pl.BlockSpec((O, E), lambda t: (0, 0)),                 # embedding table
            pl.BlockSpec((B, H), lambda t: (0, 0)),                 # h0
            pl.BlockSpec((B, H), lambda t: (0, 0)),                 # c0
            pl.BlockSpec((E, 4 * H), lambda t: (0, 0)),             # W_ih^T
            pl.BlockSpec((H, 4 * H), lambda t: (0, 0)),             # W_hh^T
            pl.BlockSpec((1, 4 * H), lambda t: (0, 0)),             # gate bias
            pl.BlockSpec((H, O_pad), lambda t: (0, 0)),             # fc weight (padded)
            pl.BlockSpec((1, O_pad), lambda t: (0, 0)),             # fc bias (padded)
        ],
        out_specs=(
            pl.BlockSpec((U, B, O_pad), lambda t: (t, 0, 0)),       # per-step predictions
            pl.BlockSpec((B, H), lambda t: (0, 0)),                 # final hidden
            pl.BlockSpec((B, H), lambda t: (0, 0)),                 # final cell
        ),
        scratch_shapes=[pltpu.VMEM((B, H), jnp.float32),            # h carry
                        pltpu.VMEM((B, H), jnp.float32)],           # c carry
    )

    pred_pad, h1, c1 = pl.pallas_call(
        _decoder_seq_kernel,
        out_shape=(
            jax.ShapeDtypeStruct((T, B, O_pad), jnp.float32),
            jax.ShapeDtypeStruct((B, H), jnp.float32),
            jax.ShapeDtypeStruct((B, H), jnp.float32),
        ),
        grid_spec=grid_spec,
        compiler_params=pltpu.CompilerParams(
            dimension_semantics=("arbitrary",),       # sequential recurrence over T
            vmem_limit_bytes=32 * 1024 * 1024,
        ),
    )(tokens_3d, params.embedding, hidden[0], cell[0],
      params.w_ih_t, params.w_hh_t, params.b, params.w_fc_pad, params.b_fc_pad)

    return pred_pad[:, :, :O], h1[None], c1[None]


def decoder_forward(params, token_ids, hidden, cell):
    """Mirrors Decoder.forward (single step).

    token_ids : [B] int32     (PyTorch `input` before unsqueeze)
    hidden    : [1, B, H] f32
    cell      : [1, B, H] f32
    returns (prediction [B, O], hidden [1, B, H], cell [1, B, H])
    """
    pred_seq, h1, c1 = decoder_decode(params, token_ids[None, :], hidden, cell)
    return pred_seq[0], h1, c1


class DecoderParams:
    """Deterministic synthetic parameters matching the PyTorch module shapes."""

    def __init__(self, key, output_dim, embed_dim, hidden_dim):
        k = jax.random.split(key, 7)
        s = 0.1
        self.output_dim = output_dim
        self.embedding = s * jax.random.normal(k[0], (output_dim, embed_dim), jnp.float32)
        # PyTorch LSTM params: weight_ih [4H, E], weight_hh [4H, H], biases [4H]
        w_ih = s * jax.random.normal(k[1], (4 * hidden_dim, embed_dim), jnp.float32)
        w_hh = s * jax.random.normal(k[2], (4 * hidden_dim, hidden_dim), jnp.float32)
        b_ih = s * jax.random.normal(k[3], (4 * hidden_dim,), jnp.float32)
        b_hh = s * jax.random.normal(k[4], (4 * hidden_dim,), jnp.float32)
        # fc: weight [O, H], bias [O]
        w_fc = s * jax.random.normal(k[5], (output_dim, hidden_dim), jnp.float32)
        b_fc = s * jax.random.normal(k[6], (output_dim,), jnp.float32)

        # ---- kernel layouts ----
        self.w_ih_t = w_ih.T                                       # [E, 4H]
        self.w_hh_t = w_hh.T                                       # [H, 4H]
        self.b = (b_ih + b_hh)[None, :]                            # [1, 4H]
        o_pad = ((output_dim + 127) // 128) * 128                  # lane-dense fc output
        self.w_fc_pad = jnp.zeros((hidden_dim, o_pad), jnp.float32).at[:, :output_dim].set(w_fc.T)
        self.b_fc_pad = jnp.zeros((1, o_pad), jnp.float32).at[:, :output_dim].set(b_fc[None, :])

        # ---- reference (unpadded) layouts ----
        self.w_fc_t = w_fc.T
        self.b_fc = b_fc[None, :]


def _reference_forward(params, token_ids, hidden, cell):
    """Pure-JAX reference of the same math (PyTorch LSTM gate order i,f,g,o)."""
    x = params.embedding[token_ids]
    h, c = hidden[0], cell[0]
    H = h.shape[-1]
    gates = x @ params.w_ih_t + h @ params.w_hh_t + params.b
    i_g = jax.nn.sigmoid(gates[:, :H])
    f_g = jax.nn.sigmoid(gates[:, H:2 * H])
    g_g = jnp.tanh(gates[:, 2 * H:3 * H])
    o_g = jax.nn.sigmoid(gates[:, 3 * H:])
    c_new = f_g * c + i_g * g_g
    h_new = o_g * jnp.tanh(c_new)
    pred = h_new @ params.w_fc_t + params.b_fc
    return pred, h_new[None], c_new[None]


if __name__ == "__main__":
    OUTPUT_DIM, EMBED_DIM, HIDDEN_DIM, BATCH, T = 16, 32, 32, 8, 16

    key = jax.random.PRNGKey(0)
    k_par, k_tok, k_h, k_c = jax.random.split(key, 4)

    params = DecoderParams(k_par, OUTPUT_DIM, EMBED_DIM, HIDDEN_DIM)
    tokens_seq = jax.random.randint(k_tok, (T, BATCH), 0, OUTPUT_DIM, jnp.int32)
    hidden = 0.1 * jax.random.normal(k_h, (1, BATCH, HIDDEN_DIM), jnp.float32)
    cell = 0.1 * jax.random.normal(k_c, (1, BATCH, HIDDEN_DIM), jnp.float32)

    # --- 1) single-step forward: exact PyTorch Decoder.forward semantics ---
    pred, h1, c1 = decoder_forward(params, tokens_seq[0], hidden, cell)
    jax.block_until_ready((pred, h1, c1))
    pred_r, h1_r, c1_r = _reference_forward(params, tokens_seq[0], hidden, cell)
    assert pred.shape == (BATCH, OUTPUT_DIM)
    assert h1.shape == (1, BATCH, HIDDEN_DIM) and c1.shape == (1, BATCH, HIDDEN_DIM)
    assert jnp.allclose(pred, pred_r, atol=1e-4)
    assert jnp.allclose(h1, h1_r, atol=1e-4)
    assert jnp.allclose(c1, c1_r, atol=1e-4)

    # --- 2) fused multi-step decode (one pallas_call for the whole sequence) ---
    pred_seq, hT, cT = decoder_decode(params, tokens_seq, hidden, cell)
    jax.block_until_ready((pred_seq, hT, cT))
    h_r, c_r = hidden, cell
    preds_ref = []
    for t in range(T):
        p_r, h_r, c_r = _reference_forward(params, tokens_seq[t], h_r, c_r)
        preds_ref.append(p_r)
    preds_ref = jnp.stack(preds_ref, axis=0)
    assert pred_seq.shape == (T, BATCH, OUTPUT_DIM)
    assert jnp.allclose(pred_seq, preds_ref, atol=1e-4)
    assert jnp.allclose(hT, h_r, atol=1e-4)
    assert jnp.allclose(cT, c_r, atol=1e-4)

    print("KERNEL_OK")
</pallas_src>

<mosaic_0001>
module attributes {stable_mosaic.version = 11 : i64} {
  func.func @_decoder_seq_kernel(%arg0: i32, %arg1: memref<1x8x1xi32, #tpu.memory_space<vmem>>, %arg2: memref<16x32xf32, #tpu.memory_space<vmem>>, %arg3: memref<8x32xf32, #tpu.memory_space<vmem>>, %arg4: memref<8x32xf32, #tpu.memory_space<vmem>>, %arg5: memref<32x128xf32, #tpu.memory_space<vmem>>, %arg6: memref<32x128xf32, #tpu.memory_space<vmem>>, %arg7: memref<1x128xf32, #tpu.memory_space<vmem>>, %arg8: memref<32x128xf32, #tpu.memory_space<vmem>>, %arg9: memref<1x128xf32, #tpu.memory_space<vmem>>, %arg10: memref<1x8x128xf32, #tpu.memory_space<vmem>>, %arg11: memref<8x32xf32, #tpu.memory_space<vmem>>, %arg12: memref<8x32xf32, #tpu.memory_space<vmem>>, %arg13: memref<8x32xf32, #tpu.memory_space<vmem>>, %arg14: memref<8x32xf32, #tpu.memory_space<vmem>>) attributes {dimension_semantics = [#tpu.dimension_semantics<arbitrary>], iteration_bounds = array<i64: 1>, scalar_prefetch = 0 : i64, scratch_operands = 2 : i64, tpu.core_type = #tpu.core_type<tc>, window_params = [{transform_indices = @transform_0, window_bounds = array<i64: 1, 8, 1>}, {pipeline_mode = #tpu.pipeline_mode<synchronous>, transform_indices = @transform_1, window_bounds = array<i64: 16, 32>}, {pipeline_mode = #tpu.pipeline_mode<synchronous>, transform_indices = @transform_2, window_bounds = array<i64: 8, 32>}, {pipeline_mode = #tpu.pipeline_mode<synchronous>, transform_indices = @transform_3, window_bounds = array<i64: 8, 32>}, {pipeline_mode = #tpu.pipeline_mode<synchronous>, transform_indices = @transform_4, window_bounds = array<i64: 32, 128>}, {pipeline_mode = #tpu.pipeline_mode<synchronous>, transform_indices = @transform_5, window_bounds = array<i64: 32, 128>}, {pipeline_mode = #tpu.pipeline_mode<synchronous>, transform_indices = @transform_6, window_bounds = array<i64: 1, 128>}, {pipeline_mode = #tpu.pipeline_mode<synchronous>, transform_indices = @transform_7, window_bounds = array<i64: 32, 128>}, {pipeline_mode = #tpu.pipeline_mode<synchronous>, transform_indices = @transform_8, window_bounds = array<i64: 1, 128>}, {transform_indices = @transform_9, window_bounds = array<i64: 1, 8, 128>}, {pipeline_mode = #tpu.pipeline_mode<synchronous>, transform_indices = @transform_10, window_bounds = array<i64: 8, 32>}, {pipeline_mode = #tpu.pipeline_mode<synchronous>, transform_indices = @transform_11, window_bounds = array<i64: 8, 32>}]} {
    %c0_i32 = arith.constant 0 : i32
    %0 = arith.cmpi eq, %arg0, %c0_i32 : i32
    %1 = arith.extui %0 : i1 to i32
    %c0_i32_0 = arith.constant 0 : i32
    %2 = arith.cmpi ne, %1, %c0_i32_0 : i32
    scf.if %2 {
      %c0_33 = arith.constant 0 : index
      %c0_34 = arith.constant 0 : index
      %56 = vector.load %arg3[%c0_33, %c0_34] : memref<8x32xf32, #tpu.memory_space<vmem>>, vector<8x32xf32>
      %c0_35 = arith.constant 0 : index
      %c0_36 = arith.constant 0 : index
      %57 = vector.load %arg13[%c0_35, %c0_36] : memref<8x32xf32, #tpu.memory_space<vmem>>, vector<8x32xf32>
      tpu.vector_store %arg13[%c0_35, %c0_36], %56 {strides = array<i32>} : memref<8x32xf32, #tpu.memory_space<vmem>>, vector<8x32xf32>,
      %c0_37 = arith.constant 0 : index
      %c0_38 = arith.constant 0 : index
      %58 = vector.load %arg4[%c0_37, %c0_38] : memref<8x32xf32, #tpu.memory_space<vmem>>, vector<8x32xf32>
      %c0_39 = arith.constant 0 : index
      %c0_40 = arith.constant 0 : index
      %59 = vector.load %arg14[%c0_39, %c0_40] : memref<8x32xf32, #tpu.memory_space<vmem>>, vector<8x32xf32>
      tpu.vector_store %arg14[%c0_39, %c0_40], %58 {strides = array<i32>} : memref<8x32xf32, #tpu.memory_space<vmem>>, vector<8x32xf32>,
    } else {
    }
    %c0 = arith.constant 0 : index
    %c0_1 = arith.constant 0 : index
    %c0_2 = arith.constant 0 : index
    %3 = vector.load %arg1[%c0, %c0_1, %c0_2] : memref<1x8x1xi32, #tpu.memory_space<vmem>>, vector<1x8x1xi32>
    %c0_i32_3 = arith.constant 0 : i32
    %c15_i32 = arith.constant 15 : i32
    %4 = vector.broadcast %c0_i32_3 : i32 to vector<1x8x1xi32>
    %5 = arith.maxsi %4, %3 : vector<1x8x1xi32>
    %6 = vector.broadcast %c15_i32 : i32 to vector<1x8x1xi32>
    %7 = arith.minsi %6, %5 : vector<1x8x1xi32>
    %8 = tpu.iota {dimensions = array<i32: 2>} : vector<1x8x16xi32>
    %9 = vector.broadcast %7 : vector<1x8x1xi32> to vector<1x8x16xi32>
    %10 = arith.cmpi eq, %8, %9 : vector<1x8x16xi32>
    %11 = arith.extui %10 : vector<1x8x16xi1> to vector<1x8x16xi32>
    %12 = arith.sitofp %11 : vector<1x8x16xi32> to vector<1x8x16xf32>
    %c0_4 = arith.constant 0 : index
    %c0_5 = arith.constant 0 : index
    %13 = vector.load %arg2[%c0_4, %c0_5] : memref<16x32xf32, #tpu.memory_space<vmem>>, vector<16x32xf32>
    %c0_6 = arith.constant 0 : index
    %c0_7 = arith.constant 0 : index
    %14 = vector.load %arg5[%c0_6, %c0_7] : memref<32x128xf32, #tpu.memory_space<vmem>>, vector<32x128xf32>
    %c0_8 = arith.constant 0 : index
    %c0_9 = arith.constant 0 : index
    %15 = vector.load %arg6[%c0_8, %c0_9] : memref<32x128xf32, #tpu.memory_space<vmem>>, vector<32x128xf32>
    %c0_10 = arith.constant 0 : index
    %c0_11 = arith.constant 0 : index
    %16 = vector.load %arg8[%c0_10, %c0_11] : memref<32x128xf32, #tpu.memory_space<vmem>>, vector<32x128xf32>
    %c0_12 = arith.constant 0 : index
    %c0_13 = arith.constant 0 : index
    %17 = vector.load %arg7[%c0_12, %c0_13] : memref<1x128xf32, #tpu.memory_space<vmem>>, vector<1x128xf32>
    %18 = vector.shape_cast %17 : vector<1x128xf32> to vector<1x128xf32>
    %19 = vector.broadcast %18 : vector<1x128xf32> to vector<8x128xf32>
    %c0_14 = arith.constant 0 : index
    %c0_15 = arith.constant 0 : index
    %20 = vector.load %arg9[%c0_14, %c0_15] : memref<1x128xf32, #tpu.memory_space<vmem>>, vector<1x128xf32>
    %21 = vector.shape_cast %20 : vector<1x128xf32> to vector<1x128xf32>
    %22 = vector.broadcast %21 : vector<1x128xf32> to vector<8x128xf32>
    %c0_16 = arith.constant 0 : index
    %c0_17 = arith.constant 0 : index
    %23 = vector.load %arg13[%c0_16, %c0_17] : memref<8x32xf32, #tpu.memory_space<vmem>>, vector<8x32xf32>
    %c0_18 = arith.constant 0 : index
    %c0_19 = arith.constant 0 : index
    %24 = vector.load %arg14[%c0_18, %c0_19] : memref<8x32xf32, #tpu.memory_space<vmem>>, vector<8x32xf32>
    %25 = vector.shape_cast %12 : vector<1x8x16xf32> to vector<8x16xf32>
    %cst = arith.constant dense<0.000000e+00> : vector<8x32xf32>
    %26 = tpu.matmul %25, %13, %cst {dimension_numbers = #tpu.dot_dimension_numbers<[1], [0], [0], [1], [0, 0, 1, 1], [], []>} : vector<8x16xf32>, vector<16x32xf32>, vector<8x32xf32> -> vector<8x32xf32>
    %cst_20 = arith.constant dense<0.000000e+00> : vector<8x128xf32>
    %27 = tpu.matmul %26, %14, %cst_20 {dimension_numbers = #tpu.dot_dimension_numbers<[1], [0], [0], [1], [0, 0, 1, 1], [], []>} : vector<8x32xf32>, vector<32x128xf32>, vector<8x128xf32> -> vector<8x128xf32>
    %cst_21 = arith.constant dense<0.000000e+00> : vector<8x128xf32>
    %28 = tpu.matmul %23, %15, %cst_21 {dimension_numbers = #tpu.dot_dimension_numbers<[1], [0], [0], [1], [0, 0, 1, 1], [], []>} : vector<8x32xf32>, vector<32x128xf32>, vector<8x128xf32> -> vector<8x128xf32>
    %29 = arith.addf %27, %28 : vector<8x128xf32>
    %30 = arith.addf %29, %19 : vector<8x128xf32>
    %31 = arith.negf %30 : vector<8x128xf32>
    %32 = math.exp %31 : vector<8x128xf32>
    %cst_22 = arith.constant 1.000000e+00 : f32
    %33 = vector.broadcast %cst_22 : f32 to vector<8x128xf32>
    %34 = arith.addf %33, %32 : vector<8x128xf32>
    %35 = arith.divf %33, %34 : vector<8x128xf32>
    %36 = math.tanh %30 : vector<8x128xf32>
    %37 = vector.extract_strided_slice %35 {offsets = [0, 0], sizes = [8, 32], strides = [1, 1]} : vector<8x128xf32> to vector<8x32xf32>
    %38 = vector.extract_strided_slice %35 {offsets = [0, 32], sizes = [8, 32], strides = [1, 1]} : vector<8x128xf32> to vector<8x32xf32>
    %39 = vector.extract_strided_slice %36 {offsets = [0, 64], sizes = [8, 32], strides = [1, 1]} : vector<8x128xf32> to vector<8x32xf32>
    %40 = vector.extract_strided_slice %35 {offsets = [0, 96], sizes = [8, 32], strides = [1, 1]} : vector<8x128xf32> to vector<8x32xf32>
    %41 = arith.mulf %38, %24 : vector<8x32xf32>
    %42 = arith.mulf %37, %39 : vector<8x32xf32>
    %43 = arith.addf %41, %42 : vector<8x32xf32>
    %44 = math.tanh %43 : vector<8x32xf32>
    %45 = arith.mulf %40, %44 : vector<8x32xf32>
    %cst_23 = arith.constant dense<0.000000e+00> : vector<8x128xf32>
    %46 = tpu.matmul %45, %16, %cst_23 {dimension_numbers = #tpu.dot_dimension_numbers<[1], [0], [0], [1], [0, 0, 1, 1], [], []>} : vector<8x32xf32>, vector<32x128xf32>, vector<8x128xf32> -> vector<8x128xf32>
    %47 = arith.addf %46, %22 : vector<8x128xf32>
    %c0_24 = arith.constant 0 : index
    %c0_25 = arith.constant 0 : index
    %c0_26 = arith.constant 0 : index
    %48 = vector.load %arg10[%c0_24, %c0_25, %c0_26] : memref<1x8x128xf32, #tpu.memory_space<vmem>>, vector<1x8x128xf32>
    %49 = vector.shape_cast %48 : vector<1x8x128xf32> to vector<8x128xf32>
    %50 = vector.shape_cast %47 : vector<8x128xf32> to vector<1x8x128xf32>
    tpu.vector_store %arg10[%c0_24, %c0_25, %c0_26], %50 {strides = array<i32>} : memref<1x8x128xf32, #tpu.memory_space<vmem>>, vector<1x8x128xf32>,
    %c0_27 = arith.constant 0 : index
    %c0_28 = arith.constant 0 : index
    %51 = vector.load %arg13[%c0_27, %c0_28] : memref<8x32xf32, #tpu.memory_space<vmem>>, vector<8x32xf32>
    tpu.vector_store %arg13[%c0_27, %c0_28], %45 {strides = array<i32>} : memref<8x32xf32, #tpu.memory_space<vmem>>, vector<8x32xf32>,
    %c0_29 = arith.constant 0 : index
    %c0_30 = arith.constant 0 : index
    %52 = vector.load %arg14[%c0_29, %c0_30] : memref<8x32xf32, #tpu.memory_space<vmem>>, vector<8x32xf32>
    tpu.vector_store %arg14[%c0_29, %c0_30], %43 {strides = array<i32>} : memref<8x32xf32, #tpu.memory_space<vmem>>, vector<8x32xf32>,
    %c0_i32_31 = arith.constant 0 : i32
    %53 = arith.cmpi eq, %arg0, %c0_i32_31 : i32
    %54 = arith.extui %53 : i1 to i32
    %c0_i32_32 = arith.constant 0 : i32
    %55 = arith.cmpi ne, %54, %c0_i32_32 : i32
    scf.if %55 {
      %c0_33 = arith.constant 0 : index
      %c0_34 = arith.constant 0 : index
      %56 = vector.load %arg13[%c0_33, %c0_34] : memref<8x32xf32, #tpu.memory_space<vmem>>, vector<8x32xf32>
      %c0_35 = arith.constant 0 : index
      %c0_36 = arith.constant 0 : index
      %57 = vector.load %arg11[%c0_35, %c0_36] : memref<8x32xf32, #tpu.memory_space<vmem>>, vector<8x32xf32>
      tpu.vector_store %arg11[%c0_35, %c0_36], %56 {strides = array<i32>} : memref<8x32xf32, #tpu.memory_space<vmem>>, vector<8x32xf32>,
      %c0_37 = arith.constant 0 : index
      %c0_38 = arith.constant 0 : index
      %58 = vector.load %arg14[%c0_37, %c0_38] : memref<8x32xf32, #tpu.memory_space<vmem>>, vector<8x32xf32>
      %c0_39 = arith.constant 0 : index
      %c0_40 = arith.constant 0 : index
      %59 = vector.load %arg12[%c0_39, %c0_40] : memref<8x32xf32, #tpu.memory_space<vmem>>, vector<8x32xf32>
      tpu.vector_store %arg12[%c0_39, %c0_40], %58 {strides = array<i32>} : memref<8x32xf32, #tpu.memory_space<vmem>>, vector<8x32xf32>,
    } else {
    }
    return
  }
  func.func @transform_0(%arg0: i32) -> (i32, i32, i32) {
    %c0_i32 = arith.constant 0 : i32
    %c0_i32_0 = arith.constant 0 : i32
    %c0_i32_1 = arith.constant 0 : i32
    return %arg0, %c0_i32, %c0_i32_0 : i32, i32, i32
  }
  func.func @transform_1(%arg0: i32) -> (i32, i32) {
    %c0_i32 = arith.constant 0 : i32
    %c0_i32_0 = arith.constant 0 : i32
    %c0_i32_1 = arith.constant 0 : i32
    return %c0_i32, %c0_i32_0 : i32, i32
  }
  func.func @transform_2(%arg0: i32) -> (i32, i32) {
    %c0_i32 = arith.constant 0 : i32
    %c0_i32_0 = arith.constant 0 : i32
    %c0_i32_1 = arith.constant 0 : i32
    return %c0_i32, %c0_i32_0 : i32, i32
  }
  func.func @transform_3(%arg0: i32) -> (i32, i32) {
    %c0_i32 = arith.constant 0 : i32
    %c0_i32_0 = arith.constant 0 : i32
    %c0_i32_1 = arith.constant 0 : i32
    return %c0_i32, %c0_i32_0 : i32, i32
  }
  func.func @transform_4(%arg0: i32) -> (i32, i32) {
    %c0_i32 = arith.constant 0 : i32
    %c0_i32_0 = arith.constant 0 : i32
    %c0_i32_1 = arith.constant 0 : i32
    return %c0_i32, %c0_i32_0 : i32, i32
  }
  func.func @transform_5(%arg0: i32) -> (i32, i32) {
    %c0_i32 = arith.constant 0 : i32
    %c0_i32_0 = arith.constant 0 : i32
    %c0_i32_1 = arith.constant 0 : i32
    return %c0_i32, %c0_i32_0 : i32, i32
  }
  func.func @transform_6(%arg0: i32) -> (i32, i32) {
    %c0_i32 = arith.constant 0 : i32
    %c0_i32_0 = arith.constant 0 : i32
    %c0_i32_1 = arith.constant 0 : i32
    return %c0_i32, %c0_i32_0 : i32, i32
  }
  func.func @transform_7(%arg0: i32) -> (i32, i32) {
    %c0_i32 = arith.constant 0 : i32
    %c0_i32_0 = arith.constant 0 : i32
    %c0_i32_1 = arith.constant 0 : i32
    return %c0_i32, %c0_i32_0 : i32, i32
  }
  func.func @transform_8(%arg0: i32) -> (i32, i32) {
    %c0_i32 = arith.constant 0 : i32
    %c0_i32_0 = arith.constant 0 : i32
    %c0_i32_1 = arith.constant 0 : i32
    return %c0_i32, %c0_i32_0 : i32, i32
  }
  func.func @transform_9(%arg0: i32) -> (i32, i32, i32) {
    %c0_i32 = arith.constant 0 : i32
    %c0_i32_0 = arith.constant 0 : i32
    %c0_i32_1 = arith.constant 0 : i32
    return %arg0, %c0_i32, %c0_i32_0 : i32, i32, i32
  }
  func.func @transform_10(%arg0: i32) -> (i32, i32) {
    %c0_i32 = arith.constant 0 : i32
    %c0_i32_0 = arith.constant 0 : i32
    %c0_i32_1 = arith.constant 0 : i32
    return %c0_i32, %c0_i32_0 : i32, i32
  }
  func.func @transform_11(%arg0: i32) -> (i32, i32) {
    %c0_i32 = arith.constant 0 : i32
    %c0_i32_0 = arith.constant 0 : i32
    %c0_i32_1 = arith.constant 0 : i32
    return %c0_i32, %c0_i32_0 : i32, i32
  }
}

</mosaic_0001>

<bundles_post_ra>
// kernel: tpu_custom_call.1
= control target key start
LH: loop header
LB: loop body
LE: loop exit
PB: predicated region body
PF: predicated region fallthrough
CT: control target
= control target key end

     0   :  { %17 = vsyncpa [#allocation5], 0  ;;  %s721_s0 = inlined_call_operand.vmem [shape: s32[1,8,1], index: 0, kind: input, shape index: {}]   ;;  %s722_s1 = inlined_call_operand.hbm [shape: f32[16,32], index: 1, kind: input, shape index: {}]   ;;  %s723_s2 = inlined_call_operand.vmem [shape: f32[8,32], index: 2, kind: input, shape index: {}]   ;;  %s724_s3 = inlined_call_operand.hbm [shape: f32[8,32], index: 3, kind: input, shape index: {}]   ;;  %s725_s4 = inlined_call_operand.hbm [shape: f32[32,128], index: 4, kind: input, shape index: {}]   ;;  %s726_s5 = inlined_call_operand.hbm [shape: f32[32,128], index: 5, kind: input, shape index: {}]   ;;  %s727_s6 = inlined_call_operand.vmem [shape: f32[1,128], index: 6, kind: input, shape index: {}]   ;;  %s728_s7 = inlined_call_operand.hbm [shape: f32[32,128], index: 7, kind: input, shape index: {}]   ;;  %s729_s8 = inlined_call_operand.vmem [shape: f32[1,128], index: 8, kind: input, shape index: {}]   ;;  %s730_s9 = inlined_call_operand.hbm [shape: f32[1,8,128], index: 9, kind: output, shape index: {0}]   ;;  %s731_s10 = inlined_call_operand.hbm [shape: f32[8,32], index: 10, kind: output, shape index: {1}]   ;;  %s732_s11 = inlined_call_operand.hbm [shape: f32[8,32], index: 11, kind: output, shape index: {2}]  }
   0x1   :  { %18 = vsyncpa [#allocation8], 0 }
   0x2   :  { %19 = vsyncpa [#allocation11], 0 }
   0x3   :  { %20 = vsyncpa [#allocation6], 0  ;;  %s44_s19 = sshll.u32 %s724_s3, 4  ;;  %s45_s19 = int_to_ptr.hbm [resolvable:$true] %s44_s19 }
   0x4   :  { %21 = vsyncpa [#allocation15], 0  ;;  %s596_s20 = smov [#allocation7]   ;;  %s67_s24 = sshll.u32 %s726_s5, 4  ;;  %s68_s24 = int_to_ptr.hbm [resolvable:$true] %s67_s24 }
   0x5   :  { %s46_s21 = sshll.u32 %s596_s20, 4  ;;  %s597_s25 = smov [#allocation10]   ;;  %s47_s21 = int_to_ptr.vmem [resolvable:$true] %s46_s21 }
   0x6   :  { %49 = dma.hbm_to_vmem [thread:$0]  %s45_s19, 128, %s47_s21, [#allocation8]  }
   0x7   :  { %s69_s26 = sshll.u32 %s597_s25, 4  ;;  %s28_s29 = sshll.u32 %s722_s1, 4  ;;  %s70_s26 = int_to_ptr.vmem [resolvable:$true] %s69_s26  ;;  %s29_s29 = int_to_ptr.hbm [resolvable:$true] %s28_s29 }
   0x8   :  { %s598_s3 = smov 128   ;;  %s599_s30 = smov 8  }
   0x9   :  { %75 = dma.hbm_to_vmem [thread:$0]  %s68_s24, 512, %s70_s26, [#allocation11], %s598_s3, %s598_s3, %s599_s30  }
   0xa   :  { %s54_s14 = sshll.u32 %s725_s4, 4  ;;  %s600_s15 = smov [#allocation4]   ;;  %s55_s14 = int_to_ptr.hbm [resolvable:$true] %s54_s14 }
   0xb   :  { %s30_s16 = sshll.u32 %s600_s15, 4  ;;  %s601_s5 = smov [#allocation9]   ;;  %s31_s16 = int_to_ptr.vmem [resolvable:$true] %s30_s16 }
   0xc   :  { %36 = dma.hbm_to_vmem [thread:$0]  %s29_s29, 256, %s31_s16, [#allocation5], %s598_s3, %s598_s3, %s599_s30  }
   0xd   :  { %s56_s17 = sshll.u32 %s601_s5, 4  ;;  %s82_s1 = sshll.u32 %s728_s7, 4  ;;  %s57_s17 = int_to_ptr.vmem [resolvable:$true] %s56_s17  ;;  %s83_s1 = int_to_ptr.hbm [resolvable:$true] %s82_s1 }
   0xe   :  { %62 = dma.hbm_to_vmem [thread:$0]  %s55_s14, 512, %s57_s17, [#allocation8], %s598_s3, %s598_s3, %s599_s30  }
   0xf   :  { %s602_s20 = smov [#allocation12]  }
  0x10   :  { %s84_s21 = sshll.u32 %s602_s20, 4  ;;  %s85_s21 = int_to_ptr.vmem [resolvable:$true] %s84_s21 }
  0x11   :  { %90 = dma.hbm_to_vmem [thread:$0]  %s83_s1, 512, %s85_s21, [#allocation11], %s598_s3, %s598_s3, %s599_s30  }
  0x12   :  { %586 = dma.done.wait [#allocation5], 256  }
  0x13   :  { %587 = vsyncadd [#allocation5], 4294967040 }
  0x14   :  { %588 = dma.done.wait [#allocation8], 640  }
  0x15   :  { %589 = vsyncadd [#allocation8], 4294966656 }
  0x16   :  { %590 = dma.done.wait [#allocation11], 1024  }
  0x17   :  { %591 = vsyncadd [#allocation11], 4294966272  ;;  %v603_v0 = vmov 0   ;;  %v122_v1 = vld [vmem:[%s721_s0] sm:$0xff]  ;;  %v136_v2 = vld [vmem:[#allocation4 + $0x8] sm:$0xff]  ;;  %v127_v9 = vlaneseq  ;;  %vm159_vm2 = vcmask 130048  }
  0x18   :  { %383 = vset.pattern.permute.xlu0 %v603_v0  ;;  %vm123_vm0 = vcmp.gt.s32.totalorder %v122_v1, 0  ;;  %177 = vmatpush.msra.mxu0 %v136_v2  ;;  %v135_v5 = vld [vmem:[#allocation4] sm:$0xff]  ;;  %v140_v6 = vld [vmem:[#allocation9 + $0x18] sm:$0xff]  ;;  %v139_v7 = vld [vmem:[#allocation9 + $0x10] sm:$0xff]  ;;  %v604_v12 = vmov 0.0   ;;  %vm118_vm4 = vcmask 261120  }
  0x19   :  { %v124_v3 = vsel %vm123_vm0, %v122_v1, 0  ;;  %222 = vmatpush.msra.mxu2 %v140_v6  ;;  %v138_v8 = vld [vmem:[#allocation9 + $0x8] sm:$0xff]  ;;  %v128_v10 = vand.u32 127, %v127_v9  ;;  %v117_v14 = vld [vmem:[%s723_s2] sm:$0xff]  ;;  %v137_v16 = vld [vmem:[#allocation9] sm:$0xff]  ;;  %s605_s2 = smov 32  }
  0x1a   :  { %vm125_vm1 = vcmp.lt.s32.totalorder %v124_v3, 15  ;;  %178 = vmatpush.msra.mxu0 %v135_v5  ;;  %v144_v15 = vld [vmem:[#allocation10 + $0x18] sm:$0xff]  ;;  %119 = vst.msk [vmem:[#allocation2] sm:$0xff] %vm118_vm4, %v117_v14  ;;  %v143_v17 = vld [vmem:[#allocation10 + $0x10] sm:$0xff]  ;;  %v142_v18 = vld [vmem:[#allocation10 + $0x8] sm:$0xff]  ;;  %s606_s25 = smov 64  }
  0x1b   :  { %v126_v4 = vsel %vm125_vm1, %v124_v3, 15  ;;  %223 = vmatpush.msra.mxu2 %v139_v7  ;;  %199 = vmatpush.msra.mxu1 %v144_v15  ;;  %v120_v19 = vld [vmem:[#allocation7] sm:$0xff]  ;;  %v141_v20 = vld [vmem:[#allocation10] sm:$0xff]  ;;  %v147_v51 = vld [vmem:[#allocation12 + $0x10] sm:$0xff]  ;;  %s608_s26 = smov [#allocation14]   ;;  %s330_s3 = sshll.u32 %s731_s10, 4  ;;  %s331_s3 = int_to_ptr.hbm [resolvable:$true] %s330_s3 }
  0x1c   :  { %130 = vperm.xlu0 %383, %v126_v4   ;;  %121 = vst.msk [vmem:[#allocation3] sm:$0xff] %vm118_vm4, %v120_v19  ;;  %v384_v25 = vld [vmem:[%s727_s6] ss:$0 sm:$0xff]  ;;  %s607_s6 = smov 96   ;;  %v146_v52 = vld [vmem:[#allocation12 + $0x8] sm:$0xff]  ;;  %v145_v53 = vld [vmem:[#allocation12] sm:$0xff] }
  0x1d   :  { %224 = vmatpush.msra.mxu2 %v138_v8  ;;  %200 = vmatpush.msra.mxu1 %v143_v17  ;;  %v148_v50 = vld [vmem:[#allocation12 + $0x18] sm:$0xff]  ;;  %s328_s27 = sshll.u32 %s608_s26, 4  ;;  %s609_s30 = smov [#allocation16]   ;;  %s329_s27 = int_to_ptr.vmem [resolvable:$true] %s328_s27 }
  0x1e   :  { %289 = vmatpush.msra.mxu3 %v148_v50  ;;  %s339_s12 = sshll.u32 %s609_s30, 4  ;;  %s341_s15 = sshll.u32 %s732_s11, 4  ;;  %v385_v60 = vld [vmem:[%s729_s8] ss:$0 sm:$0xff]  ;;  %s340_s12 = int_to_ptr.vmem [resolvable:$true] %s339_s12  ;;  %s342_s15 = int_to_ptr.hbm [resolvable:$true] %s341_s15 }
  0x1f   :  { %225 = vmatpush.msra.mxu2 %v137_v16  ;;  %201 = vmatpush.msra.mxu1 %v142_v18  ;;  %s610_s10 = smov [#allocation13]   ;;  %s319_s1 = sshll.u32 %s730_s9, 4  ;;  %s320_s1 = int_to_ptr.hbm [resolvable:$true] %s319_s1 }
  0x20   :  { %290 = vmatpush.msra.mxu3 %v147_v51  ;;  %s317_s17 = sshll.u32 %s610_s10, 4  ;;  %s318_s17 = int_to_ptr.vmem [resolvable:$true] %s317_s17 }
  0x21   :  { %202 = vmatpush.msra.mxu1 %v141_v20  ;;  %v157_v21 = vld [vmem:[#allocation2] sm:$0xff] }
  0x22   :  { %364 = vmatmul.msk.f32.vlgmr.msra.gmra.mxu1 %vm118_vm4, %v157_v21  ;;  %291 = vmatpush.msra.mxu3 %v146_v52 }
  0x23   :  { %v158_v22 = vld [vmem:[#allocation3] sm:$0xff] }
  0x24   :  { %252 = vrot.lane.b32.xlu1 %v158_v22, %s605_s2  ;;  %292 = vmatpush.msra.mxu3 %v145_v53 }
  0x8e   :  { %v131_v11 = vpop.permute.xlu0 %130 }
  0x8f   :  { %vm132_vm3 = vcmp.eq.s32.totalorder %v128_v10, %v131_v11 }
  0x90   :  { %v362_v13 = vsel %vm132_vm3, 1.0, %v604_v12 }
  0x91   :  { %363 = vmatmul.msk.f32.vlgmr.msra.gmra.mxu0 %vm159_vm2, %v362_v13 }
  0x96   :  { %v253_v45 = vpop.permute.xlu1 %252 }
  0x9f   :  { %v204_v24 = vpop.f32.mrf.mxu1 }
 0x10e   :  { %v180_v23 = vpop.f32.mrf.mxu0 }
 0x10f   :  { %365 = vmatmul.msk.f32.vlgmr.msra.gmra.mxu2 %vm118_vm4, %v180_v23 }
 0x192   :  { %v227_v26 = vpop.f32.mrf.mxu2 }
 0x193   :  { %v228_v27 = vadd.f32 %v227_v26, %v204_v24 }
 0x195   :  { %v230_v28 = vadd.f32 %v384_v25, %v228_v27 }
 0x197   :  { %386 = vtanh.f32 %v230_v28  ;;  %v366_v30 = vmul.f32 -1.442695, %v230_v28 }
 0x199   :  { %388 = vpow2.f32 %v366_v30 }
 0x19d   :  { %v387_v29 = vpop.eup %386 }
 0x19e   :  { %257 = vrot.lane.b32.xlu0 %v387_v29, %s606_s25 }
 0x19f   :  { %v389_v31 = vpop.eup %388 }
 0x1a0   :  { %v234_v32 = vadd.f32 1.0, %v389_v31 }
 0x1a2   :  { %390 = vrcp.f32 %v234_v32  ;;  %v246_v38 = vand.u32 2147483648, %v234_v32  ;;  %vm240_vm6 = vweird.f32 %v234_v32  ;;  %v244_v39 = vand.u32 2147483647, %v234_v32 }
 0x1a4   :  { %v247_v41 = vor.u32 1.1754944e-38, %v246_v38  ;;  %vm245_vm8 = vcmp.eq.f32.partialorder %v244_v39, 8.507059e+37 }
 0x1a8   :  { %v391_v33 = vpop.eup %390 }
 0x1a9   :  { %v236_v34 = vmul.f32 %v391_v33, %v234_v32  ;;  %vm241_vm5 = vweird.f32 %v391_v33 }
 0x1aa   :  { %vm242_vm7 = vmor %vm240_vm6, %vm241_vm5 }
 0x1ab   :  { %v237_v35 = vsub.f32 1.0, %v236_v34 }
 0x1ad   :  { %v238_v36 = vmul.f32 %v391_v33, %v237_v35 }
 0x1af   :  { %v239_v37 = vadd.f32 %v391_v33, %v238_v36 }
 0x1b1   :  { %v243_v40 = vsel %vm242_vm7, %v391_v33, %v239_v37 }
 0x1b2   :  { %v248_v42 = vsel %vm245_vm8, %v247_v41, %v243_v40 }
 0x1b3   :  { %v255_v46 = vmul.f32 %v253_v45, %v248_v42 }
 0x210   :  { %v258_v43 = vpop.permute.xlu0 %257 }
 0x211   :  { %v260_v44 = vmul.f32 %v258_v43, %v248_v42 }
 0x213   :  { %262 = vrot.lane.b32.xlu1 %v260_v44, %s605_s2 }
 0x285   :  { %v263_v47 = vpop.permute.xlu1 %262 }
 0x286   :  { %v265_v48 = vadd.f32 %v263_v47, %v255_v46 }
 0x288   :  { %392 = vtanh.f32 %v265_v48  ;;  %301 = vrot.lane.b32.xlu0 %v265_v48, %s607_s6 }
 0x28e   :  { %v393_v49 = vpop.eup %392 }
 0x28f   :  { %268 = vrot.lane.b32.xlu2 %v393_v49, %s606_s25 }
 0x2e9   :  { %v269_v54 = vpop.permute.xlu2 %268 }
 0x2ea   :  { %v271_v55 = vmul.f32 %v269_v54, %v248_v42 }
 0x2ec   :  { %273 = vrot.lane.b32.xlu2 %v271_v55, %s605_s2 }
 0x2fa   :  { %v302_v56 = vpop.permute.xlu0 %301 }
 0x2fb   :  { %304 = vst.msk [vmem:[#allocation3] sm:$0xff] %vm118_vm4, %v302_v56 }
 0x302   :  { %v310_v57 = vld [vmem:[#allocation3] sm:$0xff] }
 0x303   :  { %311 = vst.msk [vmem:[#allocation16] sm:$0xff] %vm118_vm4, %v310_v57 }
 0x346   :  { %v274_v58 = vpop.permute.xlu2 %273 }
 0x347   :  { %299 = vst.msk [vmem:[#allocation2] sm:$0xff] %vm118_vm4, %v274_v58  ;;  %367 = vmatmul.msk.f32.vlgmr.msra.gmra.mxu3 %vm118_vm4, %v274_v58 }
 0x34e   :  { %v308_v59 = vld [vmem:[#allocation2] sm:$0xff] }
 0x34f   :  { %309 = vst.msk [vmem:[#allocation14] sm:$0xff] %vm118_vm4, %v308_v59 }
 0x350   :  { %333 = dma.vmem_to_hbm [thread:$0]  %s329_s27, 128, %s331_s3, [#allocation15]  }
 0x351   :  { %344 = dma.vmem_to_hbm [thread:$0]  %s340_s12, 128, %s342_s15, [#allocation15]  }
 0x3ca   :  { %v294_v61 = vpop.f32.mrf.mxu3 }
 0x3cb   :  { %v295_v62 = vadd.f32 %v385_v60, %v294_v61 }
 0x3cd   :  { %297 = vst [vmem:[#allocation13] sm:$0xff] %v295_v62 }
 0x3ce   :  { %322 = dma.vmem_to_hbm [thread:$0]  %s318_s17, 128, %s320_s1, [#allocation6]  }
 0x3cf   :  { %592 = dma.done.wait [#allocation6], 128  }
 0x3d0   :  { %593 = vsyncadd [#allocation6], 4294967168 }
 0x3d1   :  { %594 = dma.done.wait [#allocation15], 256  }
 0x3d2   :  { %595 = vsyncadd [#allocation15], 4294967040 }
 0x3d3   :  { %357 = vsyncpa [#allocation5], 1 }
 0x3d4   :  { %358 = vsyncpa [#allocation8], 1 }
 0x3d5   :  { %359 = vsyncpa [#allocation11], 1 }
 0x3d6   :  { %360 = vsyncpa [#allocation6], 1 }
 0x3d7   :  { %361 = vsyncpa [#allocation15], 1 }

</bundles_post_ra>
